<compile_context>
chip_gen: v7x
topology: tpu7x:2x2x1
jax: 0.10.0
libtpu: 0.0.40
codegen_flags: <defaults>
</compile_context>

<pallas_src>
import math
from functools import partial

import jax
import jax.numpy as jnp
from jax import lax
from jax.experimental import pallas as pl
from jax.experimental.pallas import tpu as pltpu


# ----------------------------------------------------------------------------
# helpers
# ----------------------------------------------------------------------------

def _pick_tile(dim, target, mult):
    """Largest tile <= target that divides `dim` and is a multiple of `mult`;
    falls back to the full dim (always legal per the (8,128) block rule)."""
    if dim <= target:
        return dim
    t = (target // mult) * mult
    while t >= mult:
        if dim % t == 0:
            return t
        t -= mult
    return dim


# ----------------------------------------------------------------------------
# fused linear (+ optional ReLU) kernel:  y = x @ W + b
# ----------------------------------------------------------------------------

def _linear_kernel(x_ref, w_ref, b_ref, o_ref, acc_ref, *, relu):
    k_idx = pl.program_id(2)

    @pl.when(k_idx == 0)
    def _():
        acc_ref[...] = jnp.zeros_like(acc_ref)

    acc_ref[...] += jnp.dot(x_ref[...], w_ref[...],
                            preferred_element_type=jnp.float32)

    @pl.when(k_idx == pl.num_programs(2) - 1)
    def _():
        y = acc_ref[...] + b_ref[...].astype(jnp.float32)
        if relu:
            y = jnp.maximum(y, 0.0)
        o_ref[...] = y.astype(o_ref.dtype)


def linear(x, w, b, *, relu=False, tm_target=256, tn_target=256, tk_target=512):
    """x: (M, K), w: (K, N), b: (N,) -> (M, N)."""
    M, K = x.shape
    _, N = w.shape
    tm = _pick_tile(M, tm_target, 8)
    tn = _pick_tile(N, tn_target, 128)
    tk = _pick_tile(K, tk_target, 128)
    grid = (M // tm, N // tn, K // tk)

    return pl.pallas_call(
        partial(_linear_kernel, relu=relu),
        out_shape=jax.ShapeDtypeStruct((M, N), x.dtype),
        grid_spec=pltpu.PrefetchScalarGridSpec(
            num_scalar_prefetch=0,
            grid=grid,
            in_specs=[
                pl.BlockSpec((tm, tk), lambda i, j, k: (i, k)),
                pl.BlockSpec((tk, tn), lambda i, j, k: (k, j)),
                pl.BlockSpec((1, tn), lambda i, j, k: (0, j)),
            ],
            out_specs=pl.BlockSpec((tm, tn), lambda i, j, k: (i, j)),
            scratch_shapes=[pltpu.VMEM((tm, tn), jnp.float32)],
        ),
        compiler_params=pltpu.CompilerParams(
            dimension_semantics=("parallel", "parallel", "arbitrary")),
    )(x, w, b.reshape(1, N))


# ----------------------------------------------------------------------------
# flash-style scaled-dot-product attention kernel
#   scores = (q*scale) @ k^T ; optionally scores *= triu mask ; softmax ; @ v
# ----------------------------------------------------------------------------

def _flash_attn_kernel(q_ref, k_ref, v_ref, o_ref, m_sc, l_sc, acc_sc,
                       *, scale, causal_mult_mask, tq, tk):
    qi = pl.program_id(1)
    ki = pl.program_id(2)

    @pl.when(ki == 0)
    def _():
        m_sc[...] = jnp.full_like(m_sc, -jnp.inf)
        l_sc[...] = jnp.zeros_like(l_sc)
        acc_sc[...] = jnp.zeros_like(acc_sc)

    q = q_ref[0] * scale                      # (tq, dk), pre-scaled
    k = k_ref[0]                              # (tk, dk)
    # QK^T without an explicit transpose: contract dim 1 of q with dim 1 of k.
    s = lax.dot_general(q, k, (((1,), (1,)), ((), ())),
                        preferred_element_type=jnp.float32)     # (tq, tk)

    if causal_mult_mask:
        # Multiplicative triu mask (mask[i, j] = 1 if j >= i else 0), generated
        # in-kernel: masked scores become exactly 0 before softmax, matching
        # the reference `mask * x` semantics.
        rows = qi * tq + lax.broadcasted_iota(jnp.int32, (tq, tk), 0)
        cols = ki * tk + lax.broadcasted_iota(jnp.int32, (tq, tk), 1)
        s = jnp.where(cols >= rows, s, 0.0)

    m_prev = m_sc[...]
    m_new = jnp.maximum(m_prev, jnp.max(s, axis=-1, keepdims=True))
    alpha = jnp.exp(m_prev - m_new)
    p = jnp.exp(s - m_new)
    l_sc[...] = alpha * l_sc[...] + jnp.sum(p, axis=-1, keepdims=True)
    acc_sc[...] = alpha * acc_sc[...] + jnp.dot(
        p.astype(v_ref.dtype), v_ref[0], preferred_element_type=jnp.float32)
    m_sc[...] = m_new

    @pl.when(ki == pl.num_programs(2) - 1)
    def _():
        inv_l = pl.reciprocal(l_sc[...], approx=True)
        o_ref[0] = (acc_sc[...] * inv_l).astype(o_ref.dtype)


def flash_attention(q, k, v, *, causal_mult_mask, tq_target=256, tk_target=512):
    """q: (BH, Sq, dk), k: (BH, Sk, dk), v: (BH, Sk, dv) -> (BH, Sq, dv)."""
    BH, Sq, Dk = q.shape
    _, Sk, Dv = v.shape
    scale = 1.0 / math.sqrt(Dk)               # derived from the actual head dim
    tq = _pick_tile(Sq, tq_target, 8)
    tk = _pick_tile(Sk, tk_target, 8)
    grid = (BH, Sq // tq, Sk // tk)

    kernel = partial(_flash_attn_kernel, scale=scale,
                     causal_mult_mask=causal_mult_mask, tq=tq, tk=tk)

    return pl.pallas_call(
        kernel,
        out_shape=jax.ShapeDtypeStruct((BH, Sq, Dv), q.dtype),
        grid_spec=pltpu.PrefetchScalarGridSpec(
            num_scalar_prefetch=0,
            grid=grid,
            in_specs=[
                pl.BlockSpec((1, tq, Dk), lambda b, i, j: (b, i, 0)),
                pl.BlockSpec((1, tk, Dk), lambda b, i, j: (b, j, 0)),
                pl.BlockSpec((1, tk, Dv), lambda b, i, j: (b, j, 0)),
            ],
            out_specs=pl.BlockSpec((1, tq, Dv), lambda b, i, j: (b, i, 0)),
            scratch_shapes=[
                pltpu.VMEM((tq, 1), jnp.float32),    # m_i
                pltpu.VMEM((tq, 1), jnp.float32),    # l_i
                pltpu.VMEM((tq, Dv), jnp.float32),   # acc
            ],
        ),
        compiler_params=pltpu.CompilerParams(
            dimension_semantics=("parallel", "parallel", "arbitrary")),
    )(q, k, v)


# ----------------------------------------------------------------------------
# fused residual add + LayerNorm kernel
# ----------------------------------------------------------------------------

def _add_ln_kernel(x_ref, r_ref, g_ref, b_ref, o_ref, *, eps):
    x = x_ref[...].astype(jnp.float32) + r_ref[...].astype(jnp.float32)
    mean = jnp.mean(x, axis=-1, keepdims=True)
    xc = x - mean
    var = jnp.mean(xc * xc, axis=-1, keepdims=True)
    y = xc * lax.rsqrt(var + eps)
    y = y * g_ref[...].astype(jnp.float32) + b_ref[...].astype(jnp.float32)
    o_ref[...] = y.astype(o_ref.dtype)


def add_layernorm(x, r, gamma, beta, *, eps=1e-5, tm_target=256):
    """LayerNorm(x + r) over the last dim.  x, r: (M, D)."""
    M, D = x.shape
    tm = _pick_tile(M, tm_target, 8)
    return pl.pallas_call(
        partial(_add_ln_kernel, eps=eps),
        out_shape=jax.ShapeDtypeStruct((M, D), x.dtype),
        grid_spec=pltpu.PrefetchScalarGridSpec(
            num_scalar_prefetch=0,
            grid=(M // tm,),
            in_specs=[
                pl.BlockSpec((tm, D), lambda i: (i, 0)),
                pl.BlockSpec((tm, D), lambda i: (i, 0)),
                pl.BlockSpec((1, D), lambda i: (0, 0)),
                pl.BlockSpec((1, D), lambda i: (0, 0)),
            ],
            out_specs=pl.BlockSpec((tm, D), lambda i: (i, 0)),
        ),
        compiler_params=pltpu.CompilerParams(
            dimension_semantics=("parallel",)),
    )(x, r, gamma.reshape(1, D), beta.reshape(1, D))


# ----------------------------------------------------------------------------
# module-level wrappers (layout plumbing between kernels is plain XLA)
# ----------------------------------------------------------------------------

def multi_head_attn(q_in, k_in, v_in, p, *, n_heads, causal_mult_mask):
    B, Sq, D = q_in.shape
    _, Sk, _ = k_in.shape
    dk = D // n_heads

    # Stacked per-head projections: one lane-dense (B*S, D) @ (D, H*dk) matmul.
    q = linear(q_in.reshape(B * Sq, D), p["wq"], p["bq"])
    k = linear(k_in.reshape(B * Sk, D), p["wk"], p["bk"])
    v = linear(v_in.reshape(B * Sk, D), p["wv"], p["bv"])

    # (B*S, H*dk) -> (B*H, S, dk): fold batch and heads into the grid axis.
    q = q.reshape(B, Sq, n_heads, dk).transpose(0, 2, 1, 3).reshape(B * n_heads, Sq, dk)
    k = k.reshape(B, Sk, n_heads, dk).transpose(0, 2, 1, 3).reshape(B * n_heads, Sk, dk)
    v = v.reshape(B, Sk, n_heads, dk).transpose(0, 2, 1, 3).reshape(B * n_heads, Sk, dk)

    o = flash_attention(q, k, v, causal_mult_mask=causal_mult_mask)

    # (B*H, Sq, dk) -> (B*Sq, D): equals torch.cat(heads, dim=-1).
    o = o.reshape(B, n_heads, Sq, dk).transpose(0, 2, 1, 3).reshape(B * Sq, D)
    out = linear(o, p["wo"], p["bo"])
    return out.reshape(B, Sq, D)


def decoder_layer(decoder_in, encoder_out, params, *, n_heads):
    B, S, D = decoder_in.shape
    x = decoder_in

    # masked self-attention (triu multiplicative mask, generated in-kernel)
    a1 = multi_head_attn(x, x, x, params["masked_attn"],
                         n_heads=n_heads, causal_mult_mask=True)
    x = add_layernorm(x.reshape(B * S, D), a1.reshape(B * S, D),
                      params["ln1_w"], params["ln1_b"]).reshape(B, S, D)

    # cross-attention (no mask)
    a2 = multi_head_attn(x, encoder_out, encoder_out, params["attn"],
                         n_heads=n_heads, causal_mult_mask=False)
    x = add_layernorm(x.reshape(B * S, D), a2.reshape(B * S, D),
                      params["ln2_w"], params["ln2_b"]).reshape(B, S, D)

    # position-wise feed-forward
    h = linear(x.reshape(B * S, D), params["ff_w1"], params["ff_b1"], relu=True)
    f = linear(h, params["ff_w2"], params["ff_b2"])
    x = add_layernorm(x.reshape(B * S, D), f,
                      params["ln3_w"], params["ln3_b"]).reshape(B, S, D)
    return x


# ----------------------------------------------------------------------------
# pure-JAX reference & parameter construction (for the self-test)
# ----------------------------------------------------------------------------

def _mm(a, b):
    return jnp.matmul(a, b, precision=lax.Precision.HIGHEST)


def _decoder_ref(decoder_in, encoder_out, params, *, n_heads, eps=1e-5):
    B, S, D = decoder_in.shape
    mask = jnp.triu(jnp.ones((S, S), dtype=decoder_in.dtype))

    def ln(x, g, b):
        m = x.mean(-1, keepdims=True)
        v = ((x - m) ** 2).mean(-1, keepdims=True)
        return (x - m) / jnp.sqrt(v + eps) * g + b

    def mha(qi, ki, vi, p, msk=None):
        dk = D // n_heads
        q = _mm(qi, p["wq"]) + p["bq"]
        k = _mm(ki, p["wk"]) + p["bk"]
        v = _mm(vi, p["wv"]) + p["bv"]
        q = q.reshape(B, -1, n_heads, dk).transpose(0, 2, 1, 3)
        k = k.reshape(B, -1, n_heads, dk).transpose(0, 2, 1, 3)
        v = v.reshape(B, -1, n_heads, dk).transpose(0, 2, 1, 3)
        s = jnp.einsum("bhqd,bhkd->bhqk", q, k,
                       precision=lax.Precision.HIGHEST) / math.sqrt(dk)
        if msk is not None:
            s = msk * s
        a = jax.nn.softmax(s, axis=-1)
        o = jnp.einsum("bhqk,bhkd->bhqd", a, v,
                       precision=lax.Precision.HIGHEST)
        o = o.transpose(0, 2, 1, 3).reshape(B, -1, D)
        return _mm(o, p["wo"]) + p["bo"]

    x = decoder_in
    x = ln(x + mha(x, x, x, params["masked_attn"], msk=mask),
           params["ln1_w"], params["ln1_b"])
    x = ln(x + mha(x, encoder_out, encoder_out, params["attn"]),
           params["ln2_w"], params["ln2_b"])
    h = jnp.maximum(_mm(x, params["ff_w1"]) + params["ff_b1"], 0.0)
    f = _mm(h, params["ff_w2"]) + params["ff_b2"]
    x = ln(x + f, params["ln3_w"], params["ln3_b"])
    return x


def make_params(key, d_model, n_heads, d_ff, dtype=jnp.float32):
    dk = d_model // n_heads

    def lin(k, fan_in, fan_out):
        bound = 1.0 / math.sqrt(fan_in)
        kw, kb = jax.random.split(k)
        w = jax.random.uniform(kw, (fan_in, fan_out), dtype, -bound, bound)
        b = jax.random.uniform(kb, (fan_out,), dtype, -bound, bound)
        return w, b

    def mha_params(k):
        k1, k2, k3, k4 = jax.random.split(k, 4)
        wq, bq = lin(k1, d_model, n_heads * dk)
        wk, bk = lin(k2, d_model, n_heads * dk)
        wv, bv = lin(k3, d_model, n_heads * dk)
        wo, bo = lin(k4, d_model, d_model)
        return dict(wq=wq, bq=bq, wk=wk, bk=bk, wv=wv, bv=bv, wo=wo, bo=bo)

    ks = jax.random.split(key, 4)
    p = {
        "masked_attn": mha_params(ks[0]),
        "attn": mha_params(ks[1]),
        "ln1_w": jnp.ones((d_model,), dtype), "ln1_b": jnp.zeros((d_model,), dtype),
        "ln2_w": jnp.ones((d_model,), dtype), "ln2_b": jnp.zeros((d_model,), dtype),
        "ln3_w": jnp.ones((d_model,), dtype), "ln3_b": jnp.zeros((d_model,), dtype),
    }
    p["ff_w1"], p["ff_b1"] = lin(ks[2], d_model, d_ff)
    p["ff_w2"], p["ff_b2"] = lin(ks[3], d_ff, d_model)
    return p


if __name__ == "__main__":
    key = jax.random.PRNGKey(0)
    B, S, d_model, n_heads, d_ff = 2, 16, 256, 4, 512

    k1, k2, k3 = jax.random.split(key, 3)
    params = make_params(k1, d_model, n_heads, d_ff)
    decoder_in = jax.random.normal(k2, (B, S, d_model), dtype=jnp.float32)
    encoder_out = jax.random.normal(k3, (B, S, d_model), dtype=jnp.float32)

    out = decoder_layer(decoder_in, encoder_out, params, n_heads=n_heads)
    out = jax.block_until_ready(out)

    ref = _decoder_ref(decoder_in, encoder_out, params, n_heads=n_heads)
    assert out.shape == (B, S, d_model)
    err = float(jnp.max(jnp.abs(out - ref)))
    assert jnp.allclose(out, ref, atol=2e-3, rtol=2e-3), err

    print("KERNEL_OK")
</pallas_src>

<mosaic_0001>
module attributes {stable_mosaic.version = 11 : i64} {
  func.func @_linear_kernel(%arg0: i32, %arg1: i32, %arg2: i32, %arg3: memref<32x256xf32, #tpu.memory_space<vmem>>, %arg4: memref<256x256xf32, #tpu.memory_space<vmem>>, %arg5: memref<1x256xf32, #tpu.memory_space<vmem>>, %arg6: memref<32x256xf32, #tpu.memory_space<vmem>>, %arg7: memref<32x256xf32, #tpu.memory_space<vmem>>) attributes {dimension_semantics = [#tpu.dimension_semantics<parallel>, #tpu.dimension_semantics<parallel>, #tpu.dimension_semantics<arbitrary>], iteration_bounds = array<i64: 1, 1, 1>, scalar_prefetch = 0 : i64, scratch_operands = 1 : i64, tpu.core_type = #tpu.core_type<tc>, window_params = [{transform_indices = @transform_0, window_bounds = array<i64: 32, 256>}, {transform_indices = @transform_1, window_bounds = array<i64: 256, 256>}, {transform_indices = @transform_2, window_bounds = array<i64: 1, 256>}, {transform_indices = @transform_3, window_bounds = array<i64: 32, 256>}]} {
    %c0_i32 = arith.constant 0 : i32
    %0 = arith.cmpi eq, %arg2, %c0_i32 : i32
    %1 = arith.extui %0 : i1 to i32
    %c0_i32_0 = arith.constant 0 : i32
    %2 = arith.cmpi ne, %1, %c0_i32_0 : i32
    scf.if %2 {
      %cst_10 = arith.constant 0.000000e+00 : f32
      %12 = vector.broadcast %cst_10 : f32 to vector<32x256xf32>
      %c0_11 = arith.constant 0 : index
      %c0_12 = arith.constant 0 : index
      %13 = vector.load %arg7[%c0_11, %c0_12] : memref<32x256xf32, #tpu.memory_space<vmem>>, vector<32x256xf32>
      tpu.vector_store %arg7[%c0_11, %c0_12], %12 {strides = array<i32>} : memref<32x256xf32, #tpu.memory_space<vmem>>, vector<32x256xf32>,
    } else {
    }
    %c0 = arith.constant 0 : index
    %c0_1 = arith.constant 0 : index
    %3 = vector.load %arg7[%c0, %c0_1] : memref<32x256xf32, #tpu.memory_space<vmem>>, vector<32x256xf32>
    %c0_2 = arith.constant 0 : index
    %c0_3 = arith.constant 0 : index
    %4 = vector.load %arg3[%c0_2, %c0_3] : memref<32x256xf32, #tpu.memory_space<vmem>>, vector<32x256xf32>
    %c0_4 = arith.constant 0 : index
    %c0_5 = arith.constant 0 : index
    %5 = vector.load %arg4[%c0_4, %c0_5] : memref<256x256xf32, #tpu.memory_space<vmem>>, vector<256x256xf32>
    %cst = arith.constant dense<0.000000e+00> : vector<32x256xf32>
    %6 = tpu.matmul %4, %5, %cst {dimension_numbers = #tpu.dot_dimension_numbers<[1], [0], [0], [1], [0, 0, 1, 1], [], []>} : vector<32x256xf32>, vector<256x256xf32>, vector<32x256xf32> -> vector<32x256xf32>
    %7 = arith.addf %3, %6 : vector<32x256xf32>
    %c0_6 = arith.constant 0 : index
    %c0_7 = arith.constant 0 : index
    %8 = vector.load %arg7[%c0_6, %c0_7] : memref<32x256xf32, #tpu.memory_space<vmem>>, vector<32x256xf32>
    tpu.vector_store %arg7[%c0_6, %c0_7], %7 {strides = array<i32>} : memref<32x256xf32, #tpu.memory_space<vmem>>, vector<32x256xf32>,
    %c0_i32_8 = arith.constant 0 : i32
    %9 = arith.cmpi eq, %arg2, %c0_i32_8 : i32
    %10 = arith.extui %9 : i1 to i32
    %c0_i32_9 = arith.constant 0 : i32
    %11 = arith.cmpi ne, %10, %c0_i32_9 : i32
    scf.if %11 {
      %c0_10 = arith.constant 0 : index
      %c0_11 = arith.constant 0 : index
      %12 = vector.load %arg7[%c0_10, %c0_11] : memref<32x256xf32, #tpu.memory_space<vmem>>, vector<32x256xf32>
      %c0_12 = arith.constant 0 : index
      %c0_13 = arith.constant 0 : index
      %13 = vector.load %arg5[%c0_12, %c0_13] : memref<1x256xf32, #tpu.memory_space<vmem>>, vector<1x256xf32>
      %14 = vector.broadcast %13 : vector<1x256xf32> to vector<32x256xf32>
      %15 = arith.addf %12, %14 : vector<32x256xf32>
      %c0_14 = arith.constant 0 : index
      %c0_15 = arith.constant 0 : index
      %16 = vector.load %arg6[%c0_14, %c0_15] : memref<32x256xf32, #tpu.memory_space<vmem>>, vector<32x256xf32>
      tpu.vector_store %arg6[%c0_14, %c0_15], %15 {strides = array<i32>} : memref<32x256xf32, #tpu.memory_space<vmem>>, vector<32x256xf32>,
    } else {
    }
    return
  }
  func.func @transform_0(%arg0: i32, %arg1: i32, %arg2: i32) -> (i32, i32) {
    %c0_i32 = arith.constant 0 : i32
    return %arg0, %arg2 : i32, i32
  }
  func.func @transform_1(%arg0: i32, %arg1: i32, %arg2: i32) -> (i32, i32) {
    %c0_i32 = arith.constant 0 : i32
    return %arg2, %arg1 : i32, i32
  }
  func.func @transform_2(%arg0: i32, %arg1: i32, %arg2: i32) -> (i32, i32) {
    %c0_i32 = arith.constant 0 : i32
    %c0_i32_0 = arith.constant 0 : i32
    return %c0_i32, %arg1 : i32, i32
  }
  func.func @transform_3(%arg0: i32, %arg1: i32, %arg2: i32) -> (i32, i32) {
    %c0_i32 = arith.constant 0 : i32
    return %arg0, %arg1 : i32, i32
  }
}

</mosaic_0001>

<bundles_post_ra>
// kernel: tpu_custom_call.1
= control target key start
LH: loop header
LB: loop body
LE: loop exit
PB: predicated region body
PF: predicated region fallthrough
CT: control target
= control target key end

     0   :  { %8 = vsyncpa [#allocation4], 0  ;;  %s543_s0 = inlined_call_operand.hbm [shape: f32[32,256], index: 0, kind: input, shape index: {}]   ;;  %s544_s1 = inlined_call_operand.hbm [shape: f32[256,256], index: 1, kind: input, shape index: {}]   ;;  %s545_s2 = inlined_call_operand.vmem [shape: f32[1,256], index: 2, kind: input, shape index: {}]   ;;  %s546_s3 = inlined_call_operand.hbm [shape: f32[32,256], index: 3, kind: output, shape index: {}]  }
   0x1   :  { %9 = vsyncpa [#allocation7], 0 }
   0x2   :  { %10 = vsyncpa [#allocation5], 0  ;;  %s470_s12 = smov [#allocation3]   ;;  %s398_s16 = scalar_lea.hbm %s543_s0, 1024 }
   0x3   :  { %s16_s13 = sshll.u32 %s470_s12, 4  ;;  %p399_p0 = scmp.ne.s32.totalorder %s543_s0, %s398_s16  ;;  %s17_s13 = int_to_ptr.vmem [resolvable:$true] %s16_s13 }
   0x4   :  { %p402_p1 = scmp.lt.u32.totalorder %s398_s16, %s543_s0 }
   0x6   :  { %p404_p2 = pnand %p402_p1, %p399_p0 }
   0x8   :  { %407 = shalt.err (!%p404_p2)
}
   0x9   :  { %s408_s21 = scalar_lea.vmem %s17_s13, 1024  ;;  %p413_p4 = scmp.lt.s32.totalorder %s17_s13, %s17_s13 }
   0xa   :  { %p409_p3 = scmp.ne.s32.totalorder %s17_s13, %s408_s21  ;;  %p414_p5 = scmp.lt.s32.totalorder %s408_s21, %s408_s21 }
   0xc   :  { %p415_p6 = por %p414_p5, %p413_p4 }
   0xe   :  { %p416_p7 = pnand %p415_p6, %p409_p3 }
  0x10   :  { %419 = shalt.err (!%p416_p7)
}
  0x11   :  { %s471_s22 = smov 256   ;;  %s472_s23 = smov 16  }
  0x12   :  { %22 = dma.hbm_to_vmem [thread:$0]  %s543_s0, 1024, %s17_s13, [#allocation4], %s471_s22, %s471_s22, %s472_s23  }
  0x13   :  { %s473_s26 = smov [#allocation6]   ;;  %s420_s30 = scalar_lea.hbm %s544_s1, 8192 }
  0x14   :  { %s28_s27 = sshll.u32 %s473_s26, 4  ;;  %p421_p8 = scmp.ne.s32.totalorder %s544_s1, %s420_s30  ;;  %s29_s27 = int_to_ptr.vmem [resolvable:$true] %s28_s27 }
  0x15   :  { %p424_p9 = scmp.lt.u32.totalorder %s420_s30, %s544_s1 }
  0x17   :  { %p426_p10 = pnand %p424_p9, %p421_p8 }
  0x19   :  { %429 = shalt.err (!%p426_p10)
}
  0x1a   :  { %s430_s8 = scalar_lea.vmem %s29_s27, 8192  ;;  %p435_p12 = scmp.lt.s32.totalorder %s29_s27, %s29_s27 }
  0x1b   :  { %p431_p11 = scmp.ne.s32.totalorder %s29_s27, %s430_s8  ;;  %p436_p13 = scmp.lt.s32.totalorder %s430_s8, %s430_s8 }
  0x1d   :  { %p437_p0 = por %p436_p13, %p435_p12 }
  0x1f   :  { %p438_p1 = pnand %p437_p0, %p431_p11 }
  0x21   :  { %441 = shalt.err (!%p438_p1)
}
  0x22   :  { %34 = dma.hbm_to_vmem [thread:$0]  %s544_s1, 8192, %s29_s27, [#allocation7], %s471_s22, %s471_s22, %s472_s23  }
  0x23   :  { %464 = dma.done.wait [#allocation4], 1024  }
  0x24   :  { %465 = vsyncadd [#allocation4], 4294966272 }
  0x25   :  { %466 = dma.done.wait [#allocation7], 8192  }
  0x26   :  { %467 = vsyncadd [#allocation7], 4294959104  ;;  %v72_v0 = vld [vmem:[#allocation6 + $0x8] sm:$0xff]  ;;  %v74_v1 = vld [vmem:[#allocation6 + $0x18] sm:$0xff]  ;;  %s474_s11 = smov [#allocation8]  }
  0x27   :  { %v71_v2 = vld [vmem:[#allocation6] sm:$0xff]  ;;  %v297_v3 = vpack.c.bf16 %v74_v1, %v72_v0  ;;  %v73_v4 = vld [vmem:[#allocation6 + $0x10] sm:$0xff]  ;;  %v76_v5 = vld [vmem:[#allocation6 + $0x28] sm:$0xff]  ;;  %s284_s12 = sshll.u32 %s474_s11, 4  ;;  %s285_s12 = int_to_ptr.vmem [resolvable:$true] %s284_s12 }
  0x28   :  { %v78_v6 = vld [vmem:[#allocation6 + $0x38] sm:$0xff]  ;;  %v299_v7 = vpack.c.bf16 %v73_v4, %v71_v2  ;;  %v75_v9 = vld [vmem:[#allocation6 + $0x20] sm:$0xff]  ;;  %v77_v10 = vld [vmem:[#allocation6 + $0x30] sm:$0xff]  ;;  %p447_p3 = scmp.lt.s32.totalorder %s285_s12, %s285_s12 }
  0x29   :  { %v301_v8 = vpack.c.bf16 %v78_v6, %v76_v5  ;;  %v80_v11 = vld [vmem:[#allocation6 + $0x48] sm:$0xff]  ;;  %298 = vmatprep.subr.bf16.mxu0 %v297_v3  ;;  %361 = vmatprep.subr.bf16.mxu1 %v297_v3  ;;  %v82_v12 = vld [vmem:[#allocation6 + $0x58] sm:$0xff]  ;;  %v303_v13 = vpack.c.bf16 %v77_v10, %v75_v9  ;;  %v79_v15 = vld [vmem:[#allocation6 + $0x40] sm:$0xff] }
  0x2a   :  { %300 = vmatpush1.bf16.msra.mxu0 %v299_v7  ;;  %377 = vmatpush1.bf16.msra.mxu1 %v299_v7  ;;  %v305_v14 = vpack.c.bf16 %v82_v12, %v80_v11  ;;  %v81_v16 = vld [vmem:[#allocation6 + $0x50] sm:$0xff]  ;;  %v84_v17 = vld [vmem:[#allocation6 + $0x68] sm:$0xff]  ;;  %v86_v18 = vld [vmem:[#allocation6 + $0x78] sm:$0xff] }
  0x2b   :  { %302 = vmatprep.subr.bf16.mxu0 %v301_v8  ;;  %362 = vmatprep.subr.bf16.mxu1 %v301_v8  ;;  %v307_v19 = vpack.c.bf16 %v81_v16, %v79_v15  ;;  %v309_v20 = vpack.c.bf16 %v86_v18, %v84_v17  ;;  %v83_v21 = vld [vmem:[#allocation6 + $0x60] sm:$0xff]  ;;  %v85_v22 = vld [vmem:[#allocation6 + $0x70] sm:$0xff]  ;;  %v88_v23 = vld [vmem:[#allocation6 + $0x88] sm:$0xff] }
  0x2c   :  { %v90_v24 = vld [vmem:[#allocation6 + $0x98] sm:$0xff]  ;;  %v311_v25 = vpack.c.bf16 %v85_v22, %v83_v21  ;;  %v87_v27 = vld [vmem:[#allocation6 + $0x80] sm:$0xff]  ;;  %v89_v28 = vld [vmem:[#allocation6 + $0x90] sm:$0xff] }
  0x2d   :  { %v313_v26 = vpack.c.bf16 %v90_v24, %v88_v23  ;;  %v92_v29 = vld [vmem:[#allocation6 + $0xa8] sm:$0xff]  ;;  %v94_v30 = vld [vmem:[#allocation6 + $0xb8] sm:$0xff]  ;;  %v315_v31 = vpack.c.bf16 %v89_v28, %v87_v27  ;;  %v91_v33 = vld [vmem:[#allocation6 + $0xa0] sm:$0xff] }
  0x2e   :  { %304 = vmatpush1.bf16.msra.mxu0 %v303_v13  ;;  %378 = vmatpush1.bf16.msra.mxu1 %v303_v13  ;;  %v317_v32 = vpack.c.bf16 %v94_v30, %v92_v29  ;;  %v93_v34 = vld [vmem:[#allocation6 + $0xb0] sm:$0xff]  ;;  %v96_v35 = vld [vmem:[#allocation6 + $0xc8] sm:$0xff]  ;;  %v98_v36 = vld [vmem:[#allocation6 + $0xd8] sm:$0xff] }
  0x2f   :  { %306 = vmatprep.subr.bf16.mxu0 %v305_v14  ;;  %363 = vmatprep.subr.bf16.mxu1 %v305_v14  ;;  %v319_v37 = vpack.c.bf16 %v93_v34, %v91_v33  ;;  %v95_v38 = vld [vmem:[#allocation6 + $0xc0] sm:$0xff]  ;;  %v321_v39 = vpack.c.bf16 %v98_v36, %v96_v35  ;;  %v97_v40 = vld [vmem:[#allocation6 + $0xd0] sm:$0xff]  ;;  %v64_v41 = vld [vmem:[#allocation3 + $0x8] sm:$0xff] }
  0x30   :  { %v68_v42 = vld [vmem:[#allocation3 + $0x28] sm:$0xff]  ;;  %v102_v44 = vld [vmem:[#allocation6 + $0xf8] sm:$0xff]  ;;  %199 = vmatprep.mubr.f32.mxu0 %v64_v41  ;;  %v323_v45 = vpack.c.bf16 %v97_v40, %v95_v38  ;;  %v99_v47 = vld [vmem:[#allocation6 + $0xe0] sm:$0xff]  ;;  %v253_v40 = vlaneseq }
  0x31   :  { %v100_v43 = vld [vmem:[#allocation6 + $0xe8] sm:$0xff]  ;;  %211 = vmatprep.mubr.f32.mxu1 %v68_v42  ;;  %v101_v48 = vld [vmem:[#allocation6 + $0xf0] sm:$0xff]  ;;  %v106_v50 = vld [vmem:[#allocation6 + $0x118] sm:$0xff] }
  0x32   :  { %308 = vmatpush1.bf16.msra.mxu0 %v307_v19  ;;  %379 = vmatpush1.bf16.msra.mxu1 %v307_v19  ;;  %v325_v46 = vpack.c.bf16 %v102_v44, %v100_v43  ;;  %v104_v49 = vld [vmem:[#allocation6 + $0x108] sm:$0xff]  ;;  %v327_v51 = vpack.c.bf16 %v101_v48, %v99_v47  ;;  %v103_v53 = vld [vmem:[#allocation6 + $0x100] sm:$0xff]  ;;  %v105_v54 = vld [vmem:[#allocation6 + $0x110] sm:$0xff]  ;;  %v254_v41 = vshrl.u32 %v253_v40, 7 }
  0x33   :  { %310 = vmatprep.subr.bf16.mxu0 %v309_v20  ;;  %364 = vmatprep.subr.bf16.mxu1 %v309_v20  ;;  %v329_v52 = vpack.c.bf16 %v106_v50, %v104_v49  ;;  %v108_v55 = vld [vmem:[#allocation6 + $0x128] sm:$0xff]  ;;  %v110_v56 = vld [vmem:[#allocation6 + $0x138] sm:$0xff]  ;;  %v331_v57 = vpack.c.bf16 %v105_v54, %v103_v53  ;;  %v107_v59 = vld [vmem:[#allocation6 + $0x120] sm:$0xff] }
  0x34   :  { %v333_v58 = vpack.c.bf16 %v110_v56, %v108_v55  ;;  %v109_v60 = vld [vmem:[#allocation6 + $0x130] sm:$0xff]  ;;  %v112_v61 = vld [vmem:[#allocation6 + $0x148] sm:$0xff]  ;;  %v114_v62 = vld [vmem:[#allocation6 + $0x158] sm:$0xff]  ;;  %v255_v42 = vsub.s32 0, %v254_v41  ;;  %v259_v44 = vsub.s32 1, %v254_v41 }
  0x35   :  { %v335_v63 = vpack.c.bf16 %v109_v60, %v107_v59  ;;  %v337_v0 = vpack.c.bf16 %v114_v62, %v112_v61  ;;  %v111_v1 = vld [vmem:[#allocation6 + $0x140] sm:$0xff]  ;;  %v113_v2 = vld [vmem:[#allocation6 + $0x150] sm:$0xff]  ;;  %v116_v3 = vld [vmem:[#allocation6 + $0x168] sm:$0xff] }
  0x36   :  { %312 = vmatpush1.bf16.msra.mxu0 %v311_v25  ;;  %380 = vmatpush1.bf16.msra.mxu1 %v311_v25  ;;  %v118_v4 = vld [vmem:[#allocation6 + $0x178] sm:$0xff]  ;;  %v339_v5 = vpack.c.bf16 %v113_v2, %v111_v1  ;;  %v115_v7 = vld [vmem:[#allocation6 + $0x160] sm:$0xff]  ;;  %v117_v8 = vld [vmem:[#allocation6 + $0x170] sm:$0xff] }
  0x37   :  { %314 = vmatprep.subr.bf16.mxu0 %v313_v26  ;;  %365 = vmatprep.subr.bf16.mxu1 %v313_v26  ;;  %v341_v6 = vpack.c.bf16 %v118_v4, %v116_v3  ;;  %v120_v9 = vld [vmem:[#allocation6 + $0x188] sm:$0xff]  ;;  %v122_v10 = vld [vmem:[#allocation6 + $0x198] sm:$0xff]  ;;  %v343_v11 = vpack.c.bf16 %v117_v8, %v115_v7  ;;  %v119_v13 = vld [vmem:[#allocation6 + $0x180] sm:$0xff] }
  0x38   :  { %v345_v12 = vpack.c.bf16 %v122_v10, %v120_v9  ;;  %v121_v14 = vld [vmem:[#allocation6 + $0x190] sm:$0xff]  ;;  %v124_v15 = vld [vmem:[#allocation6 + $0x1a8] sm:$0xff]  ;;  %v126_v16 = vld [vmem:[#allocation6 + $0x1b8] sm:$0xff] }
  0x39   :  { %v347_v17 = vpack.c.bf16 %v121_v14, %v119_v13  ;;  %v349_v18 = vpack.c.bf16 %v126_v16, %v124_v15  ;;  %v123_v19 = vld [vmem:[#allocation6 + $0x1a0] sm:$0xff]  ;;  %v125_v20 = vld [vmem:[#allocation6 + $0x1b0] sm:$0xff]  ;;  %v128_v21 = vld [vmem:[#allocation6 + $0x1c8] sm:$0xff] }
  0x3a   :  { %316 = vmatpush1.bf16.msra.mxu0 %v315_v31  ;;  %381 = vmatpush1.bf16.msra.mxu1 %v315_v31  ;;  %v130_v22 = vld [vmem:[#allocation6 + $0x1d8] sm:$0xff]  ;;  %v351_v23 = vpack.c.bf16 %v125_v20, %v123_v19  ;;  %v127_v25 = vld [vmem:[#allocation6 + $0x1c0] sm:$0xff]  ;;  %v129_v26 = vld [vmem:[#allocation6 + $0x1d0] sm:$0xff] }
  0x3b   :  { %318 = vmatprep.subr.bf16.mxu0 %v317_v32  ;;  %366 = vmatprep.subr.bf16.mxu1 %v317_v32  ;;  %v353_v24 = vpack.c.bf16 %v130_v22, %v128_v21  ;;  %v132_v27 = vld [vmem:[#allocation6 + $0x1e8] sm:$0xff]  ;;  %v134_v28 = vld [vmem:[#allocation6 + $0x1f8] sm:$0xff]  ;;  %v355_v29 = vpack.c.bf16 %v129_v26, %v127_v25  ;;  %v131_v31 = vld [vmem:[#allocation6 + $0x1e0] sm:$0xff] }
  0x3c   :  { %v357_v30 = vpack.c.bf16 %v134_v28, %v132_v27  ;;  %v133_v32 = vld [vmem:[#allocation6 + $0x1f0] sm:$0xff]  ;;  %v63_v34 = vld [vmem:[#allocation3] sm:$0xff]  ;;  %v66_v36 = vld [vmem:[#allocation3 + $0x18] sm:$0xff] }
  0x3d   :  { %v359_v33 = vpack.c.bf16 %v133_v32, %v131_v31  ;;  %v67_v35 = vld [vmem:[#allocation3 + $0x20] sm:$0xff]  ;;  %v65_v38 = vld [vmem:[#allocation3 + $0x10] sm:$0xff] }
  0x3e   :  { %320 = vmatpush1.bf16.msra.mxu0 %v319_v37  ;;  %382 = vmatpush1.bf16.msra.mxu1 %v319_v37  ;;  %v70_v37 = vld [vmem:[#allocation3 + $0x38] sm:$0xff]  ;;  %v251_v43 = vld [vmem:[%s545_s2] sm:$0x3]  ;;  %s442_s2 = scalar_lea.vmem %s285_s12, 1024 }
  0x3f   :  { %322 = vmatprep.subr.bf16.mxu0 %v321_v39  ;;  %367 = vmatprep.subr.bf16.mxu1 %v321_v39  ;;  %v69_v39 = vld [vmem:[#allocation3 + $0x30] sm:$0xff]  ;;  %p443_p2 = scmp.ne.s32.totalorder %s285_s12, %s442_s2  ;;  %p448_p4 = scmp.lt.s32.totalorder %s442_s2, %s442_s2 }
  0x41   :  { %p449_p5 = por %p448_p4, %p447_p3 }
  0x42   :  { %324 = vmatpush1.bf16.msra.mxu0 %v323_v45  ;;  %383 = vmatpush1.bf16.msra.mxu1 %v323_v45  ;;  %v256_v45 = vrot.slane %v251_v43, %v255_v42 }
  0x43   :  { %326 = vmatprep.subr.bf16.mxu0 %v325_v46  ;;  %368 = vmatprep.subr.bf16.mxu1 %v325_v46  ;;  %v260_v46 = vrot.slane %v251_v43, %v259_v44  ;;  %p450_p6 = pnand %p449_p5, %p443_p2 }
  0x46   :  { %328 = vmatpush1.bf16.msra.mxu0 %v327_v51  ;;  %384 = vmatpush1.bf16.msra.mxu1 %v327_v51 }
  0x47   :  { %330 = vmatprep.subr.bf16.mxu0 %v329_v52  ;;  %369 = vmatprep.subr.bf16.mxu1 %v329_v52 }
  0x4a   :  { %332 = vmatpush1.bf16.msra.mxu0 %v331_v57  ;;  %385 = vmatpush1.bf16.msra.mxu1 %v331_v57 }
  0x4b   :  { %334 = vmatprep.subr.bf16.mxu0 %v333_v58  ;;  %370 = vmatprep.subr.bf16.mxu1 %v333_v58 }
  0x4e   :  { %336 = vmatpush1.bf16.msra.mxu0 %v335_v63  ;;  %386 = vmatpush1.bf16.msra.mxu1 %v335_v63 }
  0x4f   :  { %338 = vmatprep.subr.bf16.mxu0 %v337_v0  ;;  %371 = vmatprep.subr.bf16.mxu1 %v337_v0 }
  0x52   :  { %340 = vmatpush1.bf16.msra.mxu0 %v339_v5  ;;  %387 = vmatpush1.bf16.msra.mxu1 %v339_v5 }
  0x53   :  { %342 = vmatprep.subr.bf16.mxu0 %v341_v6  ;;  %372 = vmatprep.subr.bf16.mxu1 %v341_v6 }
  0x56   :  { %344 = vmatpush1.bf16.msra.mxu0 %v343_v11  ;;  %388 = vmatpush1.bf16.msra.mxu1 %v343_v11 }
  0x57   :  { %346 = vmatprep.subr.bf16.mxu0 %v345_v12  ;;  %373 = vmatprep.subr.bf16.mxu1 %v345_v12 }
  0x5a   :  { %348 = vmatpush1.bf16.msra.mxu0 %v347_v17  ;;  %389 = vmatpush1.bf16.msra.mxu1 %v347_v17 }
  0x5b   :  { %350 = vmatprep.subr.bf16.mxu0 %v349_v18  ;;  %374 = vmatprep.subr.bf16.mxu1 %v349_v18 }
  0x5e   :  { %352 = vmatpush1.bf16.msra.mxu0 %v351_v23  ;;  %390 = vmatpush1.bf16.msra.mxu1 %v351_v23 }
  0x5f   :  { %354 = vmatprep.subr.bf16.mxu0 %v353_v24  ;;  %375 = vmatprep.subr.bf16.mxu1 %v353_v24 }
  0x62   :  { %356 = vmatpush1.bf16.msra.mxu0 %v355_v29  ;;  %391 = vmatpush1.bf16.msra.mxu1 %v355_v29 }
  0x63   :  { %358 = vmatprep.subr.bf16.mxu0 %v357_v30  ;;  %376 = vmatprep.subr.bf16.mxu1 %v357_v30 }
  0x66   :  { %360 = vmatpush1.bf16.msra.mxu0 %v359_v33  ;;  %392 = vmatpush1.bf16.msra.mxu1 %v359_v33 }
  0x69   :  { %200 = vmatmul.mubr.f32.vlgmr.msra.gmra.mrb[0].mxu0 %v63_v34  ;;  %212 = vmatmul.mubr.f32.vlgmr.msra.gmra.mrb[0].mxu1 %v67_v35 }
  0x6a   :  { %205 = vmatprep.mubr.f32.mxu0 %v66_v36  ;;  %217 = vmatprep.mubr.f32.mxu1 %v70_v37 }
  0x6d   :  { %206 = vmatmul.mubr.f32.gmra.mrb[2].mxu0 %v65_v38  ;;  %218 = vmatmul.mubr.f32.gmra.mrb[2].mxu1 %v69_v39 }
 0x13c   :  { %v201_v47 = vpop.f32.mrb[0].mxu0  ;;  %v213_v48 = vpop.f32.mrb[0].mxu1 }
 0x13d   :  { %v263_v49 = vadd.f32 %v256_v45, %v201_v47  ;;  %v267_v50 = vadd.f32 %v256_v45, %v213_v48  ;;  %v203_v51 = vpop.f32.mrb[1].mxu0  ;;  %v215_v52 = vpop.f32.mrb[1].mxu1 }
 0x13e   :  { %v264_v53 = vadd.f32 %v260_v46, %v203_v51  ;;  %v268_v54 = vadd.f32 %v260_v46, %v215_v52 }
 0x13f   :  { %271 = vst [vmem:[#allocation8] sm:$0xff] %v263_v49  ;;  %275 = vst [vmem:[#allocation8 + $0x20] sm:$0xff] %v267_v50 }
 0x140   :  { %272 = vst [vmem:[#allocation8 + $0x8] sm:$0xff] %v264_v53  ;;  %276 = vst [vmem:[#allocation8 + $0x28] sm:$0xff] %v268_v54  ;;  %v207_v55 = vpop.f32.mrb[2].mxu0  ;;  %v219_v56 = vpop.f32.mrb[2].mxu1 }
 0x141   :  { %v265_v57 = vadd.f32 %v256_v45, %v207_v55  ;;  %v269_v58 = vadd.f32 %v256_v45, %v219_v56  ;;  %v209_v59 = vpop.f32.mrb[3].mxu0  ;;  %v221_v60 = vpop.f32.mrb[3].mxu1 }
 0x142   :  { %v266_v61 = vadd.f32 %v260_v46, %v209_v59  ;;  %v270_v62 = vadd.f32 %v260_v46, %v221_v60 }
 0x143   :  { %273 = vst [vmem:[#allocation8 + $0x10] sm:$0xff] %v265_v57  ;;  %277 = vst [vmem:[#allocation8 + $0x30] sm:$0xff] %v269_v58 }
 0x144   :  { %274 = vst [vmem:[#allocation8 + $0x18] sm:$0xff] %v266_v61  ;;  %278 = vst [vmem:[#allocation8 + $0x38] sm:$0xff] %v270_v62 }
 0x145   :  { %453 = shalt.err (!%p450_p6)
}
 0x146   :  { %s454_s15 = scalar_lea.hbm %s546_s3, 1024 }
 0x147   :  { %p455_p7 = scmp.ne.s32.totalorder %s546_s3, %s454_s15  ;;  %p458_p8 = scmp.lt.u32.totalorder %s454_s15, %s546_s3 }
 0x149   :  { %p460_p9 = pnand %p458_p8, %p455_p7 }
 0x14b   :  { %463 = shalt.err (!%p460_p9)
}
 0x14c   :  { %290 = dma.vmem_to_hbm [thread:$0]  %s285_s12, 1024, %s546_s3, [#allocation5], %s471_s22, %s471_s22, %s472_s23  }
 0x14d   :  { %468 = dma.done.wait [#allocation5], 1024  }
 0x14e   :  { %469 = vsyncadd [#allocation5], 4294966272 }
 0x14f   :  { %294 = vsyncpa [#allocation4], 1 }
 0x150   :  { %295 = vsyncpa [#allocation7], 1 }
 0x151   :  { %296 = vsyncpa [#allocation5], 1 }

</bundles_post_ra>
